<compile_context>
chip_gen: v7x
topology: tpu7x:2x2x1
jax: 0.10.0
libtpu: 0.0.40
codegen_flags: <defaults>
</compile_context>

<pallas_src>
import functools

import numpy as np
import jax
import jax.numpy as jnp
from jax.experimental import pallas as pl
from jax.experimental.pallas import tpu as pltpu


def _round_up(x, m):
    return ((x + m - 1) // m) * m


def _shift_down(v, k):
    """Circular lane shift: out[:, i] = v[:, (i + k) % n]  (k static, > 0)."""
    return jnp.concatenate([v[:, k:], v[:, :k]], axis=1)


def _shift_up(v, k):
    """Circular lane shift: out[:, i] = v[:, (i - k) % n]  (k static, > 0)."""
    return jnp.concatenate([v[:, -k:], v[:, :-k]], axis=1)


# --------------------------------------------------------------------------------------
# Fused kernel: (conv3x3 reflect + BN(folded) + ReLU) x 2, one image per grid step.
# --------------------------------------------------------------------------------------
def _double_conv_kernel(x_ref, code_ref, w1_ref, b1_ref, w2_ref, b2_ref,
                        out_ref, ap_ref, *, wp, s_out, cdtype):
    # x_ref   : (1, Cin_p, s_full)  reflect-padded input, flattened Hp*Wp on lanes
    # code_ref: (1, s_full) int32   border code: 0 interior, 1/2 left/right pad col,
    #                               3/4 top/bottom pad row (rows override corners)
    # w1_ref  : (C1p, 9*Cin_p)      stage-1 weights (BN folded), tap-major / channel-minor
    # b1_ref  : (C1p, 1) f32
    # w2_ref  : (C2p, 9*C1p)        stage-2 weights (BN folded)
    # b2_ref  : (C2p, 1) f32
    # out_ref : (1, C2p, s_out) f32 s_out = H*Wp (2 junk lanes per row, cropped by wrapper)
    # ap_ref  : VMEM (C1p, s_full)  scratch: reflect-padded stage-1 activation
    offs = [dy * wp + dx for dy in range(3) for dx in range(3)]
    s_full = x_ref.shape[-1]

    # ---- stage 1: 3x3 conv as one GEMM over the 9 in-kernel tap slices + bias + ReLU ----
    patches = jnp.concatenate([x_ref[0, :, o:o + s_out] for o in offs], axis=0)
    a = jnp.dot(w1_ref[...], patches, preferred_element_type=jnp.float32)   # (C1p, s_out)
    a = jnp.maximum(a + b1_ref[...], 0.0)

    # ---- rebuild the reflect padding of the stage-1 activation on the padded grid ------
    # Place `a` at flat lane offset Wp+1, then fix the 4 borders with masked circular
    # shifts (reflect pad copies from the distance-2 neighbour on the flattened grid).
    c1p = a.shape[0]
    pad_l = jnp.zeros((c1p, wp + 1), jnp.float32)
    pad_r = jnp.zeros((c1p, s_full - (wp + 1) - s_out), jnp.float32)
    ap = jnp.concatenate([pad_l, a, pad_r], axis=1)                         # (C1p, s_full)

    code = code_ref[...]                                                    # (1, s_full)
    ap = jnp.where(code == 1, _shift_down(ap, 2), ap)        # left pad col  <- col 1
    ap = jnp.where(code == 2, _shift_up(ap, 2), ap)          # right pad col <- col W-2
    ap = jnp.where(code == 3, _shift_down(ap, 2 * wp), ap)   # top pad row   <- row 1
    ap = jnp.where(code == 4, _shift_up(ap, 2 * wp), ap)     # bottom pad row<- row H-2
    ap_ref[...] = ap.astype(cdtype)

    # ---- stage 2: same GEMM formulation on the padded activation (read from VMEM) ------
    patches2 = jnp.concatenate([ap_ref[:, o:o + s_out] for o in offs], axis=0)
    y = jnp.dot(w2_ref[...], patches2, preferred_element_type=jnp.float32)  # (C2p, s_out)
    out_ref[0] = jnp.maximum(y + b2_ref[...], 0.0)


# --------------------------------------------------------------------------------------
# Parameter glue: fold eval-mode BatchNorm into the conv, pack tap-major / channel-minor
# with PADDED channel counts so kernel-side tap concatenation lines up.
# --------------------------------------------------------------------------------------
def _fold_bn_and_pack(p, c_in, c_out, cin_p, cout_p, cdtype, eps=1e-5):
    scale = p["gamma"] / jnp.sqrt(p["var"] + eps)                    # (C_out,)
    w = p["conv_w"] * scale[:, None, None, None]                     # (C_out, C_in, 3, 3)
    b = (p["conv_b"] - p["mean"]) * scale + p["beta"]
    wt = jnp.transpose(w, (0, 2, 3, 1))                              # (C_out, 3, 3, C_in)
    wt = jnp.pad(wt, ((0, cout_p - c_out), (0, 0), (0, 0), (0, cin_p - c_in)))
    w_flat = wt.reshape(cout_p, 9 * cin_p).astype(cdtype)            # col = (dy*3+dx)*Cin_p+c
    b = jnp.pad(b, (0, cout_p - c_out)).reshape(cout_p, 1).astype(jnp.float32)
    return w_flat, b


def _border_code(hp, wp, s_full):
    """int32 (1, s_full): 0 interior, 1/2 left/right pad column, 3/4 top/bottom pad row."""
    code = np.zeros(hp * wp, np.int32)
    p = np.arange(hp * wp)
    r, c = p // wp, p % wp
    code[c == 0] = 1
    code[c == wp - 1] = 2
    code[r == 0] = 3            # rows override corner columns
    code[r == hp - 1] = 4
    full = np.zeros((1, s_full), np.int32)
    full[0, :hp * wp] = code
    return jnp.asarray(full)


# --------------------------------------------------------------------------------------
# Forward wrapper
# --------------------------------------------------------------------------------------
def double_conv_forward(x, raw_params, *, compute_dtype=jnp.bfloat16, eps=1e-5):
    N, C, H, W = x.shape
    if H < 2 or W < 2:
        raise ValueError("reflect padding requires H, W >= 2")
    c_mid = raw_params["stage1"]["conv_w"].shape[0]
    c_out = raw_params["stage2"]["conv_w"].shape[0]

    unit = 16 if jnp.dtype(compute_dtype).itemsize == 2 else 8       # bf16 sublane packing
    cin_p = _round_up(C, unit)
    c1p = _round_up(c_mid, unit)
    c2p = _round_up(c_out, unit)

    hp, wp = H + 2, W + 2
    s_out = H * wp                                  # padded-width output grid (junk cropped)
    s_full = _round_up(hp * wp + 2, 128)            # taps read up to hp*wp+1; lane-dense DMA

    # Cast FIRST (halves wrapper intermediates + kernel DMA on the bf16 path), then
    # reflect-pad once (<=1.3x bytes, vs 9x for im2col) and flatten channel-major.
    xc = x.astype(compute_dtype)
    xp = jnp.pad(xc, ((0, 0), (0, 0), (1, 1), (1, 1)), mode="reflect")   # (N, C, Hp, Wp)
    xf = xp.reshape(N, C, hp * wp)
    xf = jnp.pad(xf, ((0, 0), (0, cin_p - C), (0, s_full - hp * wp)))    # (N, Cin_p, s_full)

    code = _border_code(hp, wp, s_full)

    w1, b1 = _fold_bn_and_pack(raw_params["stage1"], C, c_mid, cin_p, c1p, compute_dtype, eps)
    w2, b2 = _fold_bn_and_pack(raw_params["stage2"], c_mid, c_out, c1p, c2p, compute_dtype, eps)

    itemsize = jnp.dtype(compute_dtype).itemsize
    block_bytes = (2 * cin_p * s_full * itemsize            # x block (double-buffered)
                   + 2 * c2p * s_out * 4                    # out block (double-buffered)
                   + 2 * (c1p * 9 * cin_p + c2p * 9 * c1p) * itemsize
                   + 2 * (c1p + c2p) * 4 + 2 * s_full * 4
                   + c1p * s_full * itemsize)               # ap scratch
    try:
        vmem_cap = int(pltpu.get_tpu_info().vmem_capacity_bytes)
    except Exception:
        vmem_cap = 64 << 20                                 # conservative (v7x per-core)
    vmem_limit = int(min(max(4 * block_bytes + (16 << 20), 32 << 20), int(0.85 * vmem_cap)))

    flops = 2 * N * s_out * (c1p * 9 * cin_p + c2p * 9 * c1p)
    bytes_accessed = (xf.size * itemsize + code.size * 4
                      + (w1.size + w2.size) * itemsize + (b1.size + b2.size) * 4
                      + N * c2p * s_out * 4)
    cost = pl.CostEstimate(flops=flops, transcendentals=0, bytes_accessed=bytes_accessed)

    kernel = functools.partial(_double_conv_kernel, wp=wp, s_out=s_out, cdtype=compute_dtype)

    out = pl.pallas_call(
        kernel,
        out_shape=jax.ShapeDtypeStruct((N, c2p, s_out), jnp.float32),
        grid_spec=pltpu.PrefetchScalarGridSpec(
            num_scalar_prefetch=0,
            grid=(N,),
            in_specs=[
                pl.BlockSpec((1, cin_p, s_full), lambda n: (n, 0, 0)),
                pl.BlockSpec((1, s_full), lambda n: (0, 0)),
                pl.BlockSpec((c1p, 9 * cin_p), lambda n: (0, 0)),
                pl.BlockSpec((c1p, 1), lambda n: (0, 0)),
                pl.BlockSpec((c2p, 9 * c1p), lambda n: (0, 0)),
                pl.BlockSpec((c2p, 1), lambda n: (0, 0)),
            ],
            out_specs=pl.BlockSpec((1, c2p, s_out), lambda n: (n, 0, 0)),
            scratch_shapes=[pltpu.VMEM((c1p, s_full), compute_dtype)],
        ),
        compiler_params=pltpu.CompilerParams(
            dimension_semantics=("parallel",),
            vmem_limit_bytes=vmem_limit),
        cost_estimate=cost,
    )(xf, code, w1, b1, w2, b2)

    # Drop padded channels and the 2 junk columns per row.
    return out.reshape(N, c2p, H, wp)[:, :c_out, :, :W]


# --------------------------------------------------------------------------------------
# Deterministic params + pure-JAX reference (eval-mode BatchNorm, op-by-op)
# --------------------------------------------------------------------------------------
def init_params(key, inc, outc):
    ks = jax.random.split(key, 12)

    def stage(keys, c_in, c_out):
        return dict(
            conv_w=0.2 * jax.random.normal(keys[0], (c_out, c_in, 3, 3), jnp.float32),
            conv_b=0.1 * jax.random.normal(keys[1], (c_out,), jnp.float32),
            gamma=1.0 + 0.1 * jax.random.normal(keys[2], (c_out,), jnp.float32),
            beta=0.1 * jax.random.normal(keys[3], (c_out,), jnp.float32),
            mean=0.1 * jax.random.normal(keys[4], (c_out,), jnp.float32),
            var=0.5 + jax.random.uniform(keys[5], (c_out,), jnp.float32),
        )

    return {"stage1": stage(ks[0:6], inc, outc), "stage2": stage(ks[6:12], outc, outc)}


def reference_forward(x, raw_params, eps=1e-5):
    def stage(h, p):
        hp = jnp.pad(h, ((0, 0), (0, 0), (1, 1), (1, 1)), mode="reflect")
        y = jax.lax.conv_general_dilated(
            hp, p["conv_w"], window_strides=(1, 1), padding="VALID",
            dimension_numbers=("NCHW", "OIHW", "NCHW"),
            precision=jax.lax.Precision.HIGHEST)
        y = y + p["conv_b"][None, :, None, None]
        inv = 1.0 / jnp.sqrt(p["var"] + eps)
        y = (y - p["mean"][None, :, None, None]) * (p["gamma"] * inv)[None, :, None, None] \
            + p["beta"][None, :, None, None]
        return jnp.maximum(y, 0.0)

    return stage(stage(x, raw_params["stage1"]), raw_params["stage2"])


if __name__ == "__main__":
    key = jax.random.PRNGKey(0)
    kx, kp = jax.random.split(key)

    inc, outc = 4, 8
    N, H, W = 2, 16, 16

    x = jax.random.normal(kx, (N, inc, H, W), dtype=jnp.float32)
    raw = init_params(kp, inc, outc)

    ref = jax.block_until_ready(reference_forward(x, raw))

    # f32 path: tight numerical check of the fused kernel.
    fwd_f32 = jax.jit(functools.partial(double_conv_forward, compute_dtype=jnp.float32))
    out_f32 = jax.block_until_ready(fwd_f32(x, raw))
    assert out_f32.shape == (N, outc, H, W)
    np.testing.assert_allclose(np.asarray(out_f32), np.asarray(ref), rtol=1e-3, atol=1e-4)

    # Default bf16 path (MXU fast path, f32 accumulation): looser tolerance.
    fwd_bf16 = jax.jit(functools.partial(double_conv_forward, compute_dtype=jnp.bfloat16))
    out_bf16 = jax.block_until_ready(fwd_bf16(x, raw))
    assert out_bf16.shape == (N, outc, H, W)
    np.testing.assert_allclose(np.asarray(out_bf16), np.asarray(ref), rtol=1e-1, atol=1e-1)

    print("KERNEL_OK")
</pallas_src>

<mosaic_0001>
module attributes {stable_mosaic.version = 11 : i64} {
  func.func @_double_conv_kernel(%arg0: i32, %arg1: memref<1x8x384xf32, #tpu.memory_space<vmem>>, %arg2: memref<1x384xi32, #tpu.memory_space<vmem>>, %arg3: memref<8x72xf32, #tpu.memory_space<vmem>>, %arg4: memref<8x1xf32, #tpu.memory_space<vmem>>, %arg5: memref<8x72xf32, #tpu.memory_space<vmem>>, %arg6: memref<8x1xf32, #tpu.memory_space<vmem>>, %arg7: memref<1x8x288xf32, #tpu.memory_space<vmem>>, %arg8: memref<8x384xf32, #tpu.memory_space<vmem>>) attributes {dimension_semantics = [#tpu.dimension_semantics<parallel>], iteration_bounds = array<i64: 2>, scalar_prefetch = 0 : i64, scratch_operands = 1 : i64, tpu.core_type = #tpu.core_type<tc>, window_params = [{transform_indices = @transform_0, window_bounds = array<i64: 1, 8, 384>}, {pipeline_mode = #tpu.pipeline_mode<synchronous>, transform_indices = @transform_1, window_bounds = array<i64: 1, 384>}, {pipeline_mode = #tpu.pipeline_mode<synchronous>, transform_indices = @transform_2, window_bounds = array<i64: 8, 72>}, {pipeline_mode = #tpu.pipeline_mode<synchronous>, transform_indices = @transform_3, window_bounds = array<i64: 8, 1>}, {pipeline_mode = #tpu.pipeline_mode<synchronous>, transform_indices = @transform_4, window_bounds = array<i64: 8, 72>}, {pipeline_mode = #tpu.pipeline_mode<synchronous>, transform_indices = @transform_5, window_bounds = array<i64: 8, 1>}, {transform_indices = @transform_6, window_bounds = array<i64: 1, 8, 288>}]} {
    %c0 = arith.constant 0 : index
    %c0_0 = arith.constant 0 : index
    %c0_1 = arith.constant 0 : index
    %0 = vector.load %arg1[%c0, %c0_0, %c0_1] : memref<1x8x384xf32, #tpu.memory_space<vmem>>, vector<1x8x288xf32>
    %1 = vector.shape_cast %0 : vector<1x8x288xf32> to vector<8x288xf32>
    %c0_2 = arith.constant 0 : index
    %c0_3 = arith.constant 0 : index
    %c1 = arith.constant 1 : index
    %2 = vector.load %arg1[%c0_2, %c0_3, %c1] : memref<1x8x384xf32, #tpu.memory_space<vmem>>, vector<1x8x288xf32>
    %3 = vector.shape_cast %2 : vector<1x8x288xf32> to vector<8x288xf32>
    %c0_4 = arith.constant 0 : index
    %c0_5 = arith.constant 0 : index
    %c2 = arith.constant 2 : index
    %4 = vector.load %arg1[%c0_4, %c0_5, %c2] : memref<1x8x384xf32, #tpu.memory_space<vmem>>, vector<1x8x288xf32>
    %5 = vector.shape_cast %4 : vector<1x8x288xf32> to vector<8x288xf32>
    %c0_6 = arith.constant 0 : index
    %c0_7 = arith.constant 0 : index
    %c18 = arith.constant 18 : index
    %6 = vector.load %arg1[%c0_6, %c0_7, %c18] : memref<1x8x384xf32, #tpu.memory_space<vmem>>, vector<1x8x288xf32>
    %7 = vector.shape_cast %6 : vector<1x8x288xf32> to vector<8x288xf32>
    %c0_8 = arith.constant 0 : index
    %c0_9 = arith.constant 0 : index
    %c19 = arith.constant 19 : index
    %8 = vector.load %arg1[%c0_8, %c0_9, %c19] : memref<1x8x384xf32, #tpu.memory_space<vmem>>, vector<1x8x288xf32>
    %9 = vector.shape_cast %8 : vector<1x8x288xf32> to vector<8x288xf32>
    %c0_10 = arith.constant 0 : index
    %c0_11 = arith.constant 0 : index
    %c20 = arith.constant 20 : index
    %10 = vector.load %arg1[%c0_10, %c0_11, %c20] : memref<1x8x384xf32, #tpu.memory_space<vmem>>, vector<1x8x288xf32>
    %11 = vector.shape_cast %10 : vector<1x8x288xf32> to vector<8x288xf32>
    %c0_12 = arith.constant 0 : index
    %c0_13 = arith.constant 0 : index
    %c36 = arith.constant 36 : index
    %12 = vector.load %arg1[%c0_12, %c0_13, %c36] : memref<1x8x384xf32, #tpu.memory_space<vmem>>, vector<1x8x288xf32>
    %13 = vector.shape_cast %12 : vector<1x8x288xf32> to vector<8x288xf32>
    %c0_14 = arith.constant 0 : index
    %c0_15 = arith.constant 0 : index
    %c37 = arith.constant 37 : index
    %14 = vector.load %arg1[%c0_14, %c0_15, %c37] : memref<1x8x384xf32, #tpu.memory_space<vmem>>, vector<1x8x288xf32>
    %15 = vector.shape_cast %14 : vector<1x8x288xf32> to vector<8x288xf32>
    %c0_16 = arith.constant 0 : index
    %c0_17 = arith.constant 0 : index
    %c38 = arith.constant 38 : index
    %16 = vector.load %arg1[%c0_16, %c0_17, %c38] : memref<1x8x384xf32, #tpu.memory_space<vmem>>, vector<1x8x288xf32>
    %17 = vector.shape_cast %16 : vector<1x8x288xf32> to vector<8x288xf32>
    %18 = tpu.concatenate %1, %3, %5, %7, %9, %11, %13, %15, %17 in 0 : vector<8x288xf32>, vector<8x288xf32>, vector<8x288xf32>, vector<8x288xf32>, vector<8x288xf32>, vector<8x288xf32>, vector<8x288xf32>, vector<8x288xf32>, vector<8x288xf32> -> vector<72x288xf32>
    %c0_18 = arith.constant 0 : index
    %c0_19 = arith.constant 0 : index
    %19 = vector.load %arg3[%c0_18, %c0_19] : memref<8x72xf32, #tpu.memory_space<vmem>>, vector<8x72xf32>
    %cst = arith.constant dense<0.000000e+00> : vector<8x288xf32>
    %20 = tpu.matmul %19, %18, %cst {dimension_numbers = #tpu.dot_dimension_numbers<[1], [0], [0], [1], [0, 0, 1, 1], [], []>} : vector<8x72xf32>, vector<72x288xf32>, vector<8x288xf32> -> vector<8x288xf32>
    %c0_20 = arith.constant 0 : index
    %c0_21 = arith.constant 0 : index
    %21 = vector.load %arg4[%c0_20, %c0_21] : memref<8x1xf32, #tpu.memory_space<vmem>>, vector<8x1xf32>
    %22 = vector.broadcast %21 : vector<8x1xf32> to vector<8x288xf32>
    %23 = arith.addf %20, %22 : vector<8x288xf32>
    %cst_22 = arith.constant 0.000000e+00 : f32
    %24 = vector.broadcast %cst_22 : f32 to vector<8x288xf32>
    %25 = arith.maximumf %23, %24 : vector<8x288xf32>
    %cst_23 = arith.constant 0.000000e+00 : f32
    %26 = vector.broadcast %cst_23 : f32 to vector<8x19xf32>
    %cst_24 = arith.constant 0.000000e+00 : f32
    %27 = vector.broadcast %cst_24 : f32 to vector<8x77xf32>
    %28 = tpu.concatenate %26, %25, %27 in 1 : vector<8x19xf32>, vector<8x288xf32>, vector<8x77xf32> -> vector<8x384xf32>
    %c0_25 = arith.constant 0 : index
    %c0_26 = arith.constant 0 : index
    %29 = vector.load %arg2[%c0_25, %c0_26] : memref<1x384xi32, #tpu.memory_space<vmem>>, vector<1x384xi32>
    %c1_i32 = arith.constant 1 : i32
    %30 = vector.broadcast %c1_i32 : i32 to vector<1x384xi32>
    %31 = arith.cmpi eq, %29, %30 : vector<1x384xi32>
    %32 = vector.extract_strided_slice %28 {offsets = [0, 2], sizes = [8, 382], strides = [1, 1]} : vector<8x384xf32> to vector<8x382xf32>
    %33 = vector.extract_strided_slice %28 {offsets = [0, 0], sizes = [8, 2], strides = [1, 1]} : vector<8x384xf32> to vector<8x2xf32>
    %34 = tpu.concatenate %32, %33 in 1 : vector<8x382xf32>, vector<8x2xf32> -> vector<8x384xf32>
    %35 = vector.shape_cast %31 : vector<1x384xi1> to vector<1x384xi1>
    %36 = vector.broadcast %35 : vector<1x384xi1> to vector<8x384xi1>
    %37 = arith.select %36, %34, %28 : vector<8x384xi1>, vector<8x384xf32>
    %c2_i32 = arith.constant 2 : i32
    %38 = vector.broadcast %c2_i32 : i32 to vector<1x384xi32>
    %39 = arith.cmpi eq, %29, %38 : vector<1x384xi32>
    %40 = vector.extract_strided_slice %37 {offsets = [0, 382], sizes = [8, 2], strides = [1, 1]} : vector<8x384xf32> to vector<8x2xf32>
    %41 = vector.extract_strided_slice %37 {offsets = [0, 0], sizes = [8, 382], strides = [1, 1]} : vector<8x384xf32> to vector<8x382xf32>
    %42 = tpu.concatenate %40, %41 in 1 : vector<8x2xf32>, vector<8x382xf32> -> vector<8x384xf32>
    %43 = vector.shape_cast %39 : vector<1x384xi1> to vector<1x384xi1>
    %44 = vector.broadcast %43 : vector<1x384xi1> to vector<8x384xi1>
    %45 = arith.select %44, %42, %37 : vector<8x384xi1>, vector<8x384xf32>
    %c3_i32 = arith.constant 3 : i32
    %46 = vector.broadcast %c3_i32 : i32 to vector<1x384xi32>
    %47 = arith.cmpi eq, %29, %46 : vector<1x384xi32>
    %48 = vector.extract_strided_slice %45 {offsets = [0, 36], sizes = [8, 348], strides = [1, 1]} : vector<8x384xf32> to vector<8x348xf32>
    %49 = vector.extract_strided_slice %45 {offsets = [0, 0], sizes = [8, 36], strides = [1, 1]} : vector<8x384xf32> to vector<8x36xf32>
    %50 = tpu.concatenate %48, %49 in 1 : vector<8x348xf32>, vector<8x36xf32> -> vector<8x384xf32>
    %51 = vector.shape_cast %47 : vector<1x384xi1> to vector<1x384xi1>
    %52 = vector.broadcast %51 : vector<1x384xi1> to vector<8x384xi1>
    %53 = arith.select %52, %50, %45 : vector<8x384xi1>, vector<8x384xf32>
    %c4_i32 = arith.constant 4 : i32
    %54 = vector.broadcast %c4_i32 : i32 to vector<1x384xi32>
    %55 = arith.cmpi eq, %29, %54 : vector<1x384xi32>
    %56 = vector.extract_strided_slice %53 {offsets = [0, 348], sizes = [8, 36], strides = [1, 1]} : vector<8x384xf32> to vector<8x36xf32>
    %57 = vector.extract_strided_slice %53 {offsets = [0, 0], sizes = [8, 348], strides = [1, 1]} : vector<8x384xf32> to vector<8x348xf32>
    %58 = tpu.concatenate %56, %57 in 1 : vector<8x36xf32>, vector<8x348xf32> -> vector<8x384xf32>
    %59 = vector.shape_cast %55 : vector<1x384xi1> to vector<1x384xi1>
    %60 = vector.broadcast %59 : vector<1x384xi1> to vector<8x384xi1>
    %61 = arith.select %60, %58, %53 : vector<8x384xi1>, vector<8x384xf32>
    %c0_27 = arith.constant 0 : index
    %c0_28 = arith.constant 0 : index
    %62 = vector.load %arg8[%c0_27, %c0_28] : memref<8x384xf32, #tpu.memory_space<vmem>>, vector<8x384xf32>
    tpu.vector_store %arg8[%c0_27, %c0_28], %61 {strides = array<i32>} : memref<8x384xf32, #tpu.memory_space<vmem>>, vector<8x384xf32>,
    %c0_29 = arith.constant 0 : index
    %c0_30 = arith.constant 0 : index
    %63 = vector.load %arg8[%c0_29, %c0_30] : memref<8x384xf32, #tpu.memory_space<vmem>>, vector<8x288xf32>
    %c0_31 = arith.constant 0 : index
    %c1_32 = arith.constant 1 : index
    %64 = vector.load %arg8[%c0_31, %c1_32] : memref<8x384xf32, #tpu.memory_space<vmem>>, vector<8x288xf32>
    %c0_33 = arith.constant 0 : index
    %c2_34 = arith.constant 2 : index
    %65 = vector.load %arg8[%c0_33, %c2_34] : memref<8x384xf32, #tpu.memory_space<vmem>>, vector<8x288xf32>
    %c0_35 = arith.constant 0 : index
    %c18_36 = arith.constant 18 : index
    %66 = vector.load %arg8[%c0_35, %c18_36] : memref<8x384xf32, #tpu.memory_space<vmem>>, vector<8x288xf32>
    %c0_37 = arith.constant 0 : index
    %c19_38 = arith.constant 19 : index
    %67 = vector.load %arg8[%c0_37, %c19_38] : memref<8x384xf32, #tpu.memory_space<vmem>>, vector<8x288xf32>
    %c0_39 = arith.constant 0 : index
    %c20_40 = arith.constant 20 : index
    %68 = vector.load %arg8[%c0_39, %c20_40] : memref<8x384xf32, #tpu.memory_space<vmem>>, vector<8x288xf32>
    %c0_41 = arith.constant 0 : index
    %c36_42 = arith.constant 36 : index
    %69 = vector.load %arg8[%c0_41, %c36_42] : memref<8x384xf32, #tpu.memory_space<vmem>>, vector<8x288xf32>
    %c0_43 = arith.constant 0 : index
    %c37_44 = arith.constant 37 : index
    %70 = vector.load %arg8[%c0_43, %c37_44] : memref<8x384xf32, #tpu.memory_space<vmem>>, vector<8x288xf32>
    %c0_45 = arith.constant 0 : index
    %c38_46 = arith.constant 38 : index
    %71 = vector.load %arg8[%c0_45, %c38_46] : memref<8x384xf32, #tpu.memory_space<vmem>>, vector<8x288xf32>
    %72 = tpu.concatenate %63, %64, %65, %66, %67, %68, %69, %70, %71 in 0 : vector<8x288xf32>, vector<8x288xf32>, vector<8x288xf32>, vector<8x288xf32>, vector<8x288xf32>, vector<8x288xf32>, vector<8x288xf32>, vector<8x288xf32>, vector<8x288xf32> -> vector<72x288xf32>
    %c0_47 = arith.constant 0 : index
    %c0_48 = arith.constant 0 : index
    %73 = vector.load %arg5[%c0_47, %c0_48] : memref<8x72xf32, #tpu.memory_space<vmem>>, vector<8x72xf32>
    %cst_49 = arith.constant dense<0.000000e+00> : vector<8x288xf32>
    %74 = tpu.matmul %73, %72, %cst_49 {dimension_numbers = #tpu.dot_dimension_numbers<[1], [0], [0], [1], [0, 0, 1, 1], [], []>} : vector<8x72xf32>, vector<72x288xf32>, vector<8x288xf32> -> vector<8x288xf32>
    %c0_50 = arith.constant 0 : index
    %c0_51 = arith.constant 0 : index
    %75 = vector.load %arg6[%c0_50, %c0_51] : memref<8x1xf32, #tpu.memory_space<vmem>>, vector<8x1xf32>
    %76 = vector.broadcast %75 : vector<8x1xf32> to vector<8x288xf32>
    %77 = arith.addf %74, %76 : vector<8x288xf32>
    %cst_52 = arith.constant 0.000000e+00 : f32
    %78 = vector.broadcast %cst_52 : f32 to vector<8x288xf32>
    %79 = arith.maximumf %77, %78 : vector<8x288xf32>
    %c0_53 = arith.constant 0 : index
    %c0_54 = arith.constant 0 : index
    %c0_55 = arith.constant 0 : index
    %80 = vector.load %arg7[%c0_53, %c0_54, %c0_55] : memref<1x8x288xf32, #tpu.memory_space<vmem>>, vector<1x8x288xf32>
    %81 = vector.shape_cast %80 : vector<1x8x288xf32> to vector<8x288xf32>
    %82 = vector.shape_cast %79 : vector<8x288xf32> to vector<1x8x288xf32>
    tpu.vector_store %arg7[%c0_53, %c0_54, %c0_55], %82 {strides = array<i32>} : memref<1x8x288xf32, #tpu.memory_space<vmem>>, vector<1x8x288xf32>,
    return
  }
  func.func @transform_0(%arg0: i32) -> (i32, i32, i32) {
    %c0_i32 = arith.constant 0 : i32
    %c0_i32_0 = arith.constant 0 : i32
    %c0_i32_1 = arith.constant 0 : i32
    return %arg0, %c0_i32, %c0_i32_0 : i32, i32, i32
  }
  func.func @transform_1(%arg0: i32) -> (i32, i32) {
    %c0_i32 = arith.constant 0 : i32
    %c0_i32_0 = arith.constant 0 : i32
    %c0_i32_1 = arith.constant 0 : i32
    return %c0_i32, %c0_i32_0 : i32, i32
  }
  func.func @transform_2(%arg0: i32) -> (i32, i32) {
    %c0_i32 = arith.constant 0 : i32
    %c0_i32_0 = arith.constant 0 : i32
    %c0_i32_1 = arith.constant 0 : i32
    return %c0_i32, %c0_i32_0 : i32, i32
  }
  func.func @transform_3(%arg0: i32) -> (i32, i32) {
    %c0_i32 = arith.constant 0 : i32
    %c0_i32_0 = arith.constant 0 : i32
    %c0_i32_1 = arith.constant 0 : i32
    return %c0_i32, %c0_i32_0 : i32, i32
  }
  func.func @transform_4(%arg0: i32) -> (i32, i32) {
    %c0_i32 = arith.constant 0 : i32
    %c0_i32_0 = arith.constant 0 : i32
    %c0_i32_1 = arith.constant 0 : i32
    return %c0_i32, %c0_i32_0 : i32, i32
  }
  func.func @transform_5(%arg0: i32) -> (i32, i32) {
    %c0_i32 = arith.constant 0 : i32
    %c0_i32_0 = arith.constant 0 : i32
    %c0_i32_1 = arith.constant 0 : i32
    return %c0_i32, %c0_i32_0 : i32, i32
  }
  func.func @transform_6(%arg0: i32) -> (i32, i32, i32) {
    %c0_i32 = arith.constant 0 : i32
    %c0_i32_0 = arith.constant 0 : i32
    %c0_i32_1 = arith.constant 0 : i32
    return %arg0, %c0_i32, %c0_i32_0 : i32, i32, i32
  }
}

</mosaic_0001>

<bundles_post_ra>
// kernel: double_conv_forward.1
= control target key start
LH: loop header
LB: loop body
LE: loop exit
PB: predicated region body
PF: predicated region fallthrough
CT: control target
= control target key end

     0   :  { %s1268_s21 = smov 0   ;;  %s1435_s0 = inlined_call_operand.vmem [shape: f32[2,8,384], index: 0, kind: input, shape index: {}]   ;;  %s1436_s1 = inlined_call_operand.vmem [shape: s32[1,384], index: 1, kind: input, shape index: {}]   ;;  %s1437_s2 = inlined_call_operand.vmem [shape: f32[8,72], index: 2, kind: input, shape index: {}]   ;;  %s1438_s3 = inlined_call_operand.vmem [shape: f32[8,1], index: 3, kind: input, shape index: {}]   ;;  %s1439_s4 = inlined_call_operand.vmem [shape: f32[8,72], index: 4, kind: input, shape index: {}]   ;;  %s1440_s5 = inlined_call_operand.vmem [shape: f32[8,1], index: 5, kind: input, shape index: {}]   ;;  %s1441_s6 = inlined_call_operand.vmem [shape: f32[2,8,288], index: 6, kind: output, shape index: {}]  }
   0x1 LB: > { %s983_s22 = sadd.s32 4294967295, %s1216_s21   ;;  %p987_p0 = scmp.ge.s32.totalorder %s1216_s21, 1  ;;  %s1216_s21 = sphi %s1268_s21, %s16_s21  }
   0x2   : > { %p212_p1 = scmp.lt.s32.totalorder %s1216_s21, 3 }
   0x4   : > { %p213_p2 = pnand %p987_p0, %p212_p1 }
   0x5   : > { %p242_p3 = scmp.lt.s32.totalorder (!%p213_p2), %s983_s22, 1  ;;  %v1218_v0 = vmov (!%p213_p2), 0.0|0.0   ;;  %s1219_s27 = smov (!%p213_p2), 126   ;;  %v1224_v5 = vmov (!%p213_p2), 0.0   ;;  %vm1227_vm0 = vmmov (!%p213_p2), 0   ;;  %v1228_v6 = vmov (!%p213_p2), 0  }
   0x6   : > { %216 = sbr.rel (%p213_p2) target bundleno = 1355 (0x54b), region = 44  ;;  %1074 = vmatprep.subr.bf16.mxu1 (!%p213_p2), %v1218_v0  ;;  %s1220_s28 = smov (!%p213_p2), 127   ;;  %429 = vmatprep.mubr.f32.mxu0 (!%p213_p2), %v1224_v5  ;;  %v355_v7 = vld [vmem:[%s1438_s3] sm:$0xff] (!%p213_p2)  ;;  %vm264_vm1 = vcmask (!%p213_p2), 1039360   ;;  %vm288_vm2 = vcmask (!%p213_p2), 900096   ;;  %vm276_vm3 = vcmask (!%p213_p2), 1031168  }
   0x7   : > { %s1221_s29 = smov (!%p213_p2), 110   ;;  %s1222_s30 = smov (!%p213_p2), 108   ;;  %1034 = vmatprep.mubr.msk.f32.mxu1 (!%p213_p2), %vm1227_vm0, %v1224_v5  ;;  %1173 = vset.pattern.permute.xlu1 (!%p213_p2), %v1228_v6  ;;  %vm312_vm4 = vcmask (!%p213_p2), 883712   ;;  %vm300_vm5 = vcmask (!%p213_p2), 891904   ;;  %vm336_vm6 = vcmask (!%p213_p2), 744448   ;;  %vm324_vm7 = vcmask (!%p213_p2), 752640  }
   0x8   : > { %s1223_s7 = smov (!%p213_p2), 109   ;;  %s1225_s8 = smov (!%p213_p2), 91   ;;  %1209 = vset.pattern.permute.xlu0 (!%p213_p2), %v1228_v6  ;;  %vm348_vm8 = vcmask (!%p213_p2), 736256   ;;  %v354_v62 = vld [vmem:[%s1437_s2] sm:$0xff] (!%p213_p2)  ;;  %vm361_vm9 = vcmask (!%p213_p2), 588800   ;;  %vm518_vm10 = vcmask (!%p213_p2), 154624  }
   0x9   : > { %s1226_s9 = smov (!%p213_p2), 92   ;;  %s1229_s10 = smov (!%p213_p2), 90   ;;  %vm525_vm11 = vcmask (!%p213_p2), 416768  }
   0xa   : > { %s1230_s15 = smov (!%p213_p2), 19   ;;  %s1231_s18 = smov (!%p213_p2), 2  }
   0xb   : > { %s1232_s19 = smov (!%p213_p2), 36  }
   0xd   : > { %s1443_s22 = smov (!%p242_p3, %s983_s22), 1 }
   0xe   : > { %s1114_s23 = smul.u32 24, %s1443_s22 }
  0x10   : > { %s246_s26 = scalar_lea.vmem %s1435_s0, %s1114_s23 }
  0x11   : > { %v253_v1 = vld [vmem:[%s246_s26 + $0x8] sm:$0xff]  ;;  %v254_v2 = vld [vmem:[%s246_s26 + $0x10] sm:$0xff]  ;;  %v252_v4 = vld [vmem:[%s246_s26] sm:$0xff] }
  0x12   : > { %v1143_v3 = vpack.i.bf16 %v254_v2, %v253_v1 }
  0x14   : > { %1144 = vrot.lane.b32.xlu1 %v1143_v3, %s1219_s27  ;;  %1139 = vrot.lane.b32.xlu0 %v1143_v3, %s1220_s28 }
  0x18   : > { %1149 = vrot.lane.b32.xlu1 %v1143_v3, %s1221_s29  ;;  %258 = vrot.lane.b32.xlu0 %v252_v4, %s1220_s28 }
  0x1c   : > { %282 = vrot.lane.b32.xlu1 %v252_v4, %s1221_s29  ;;  %270 = vrot.lane.b32.xlu0 %v252_v4, %s1219_s27 }
  0x20   : > { %1159 = vrot.lane.b32.xlu1 %v1143_v3, %s1222_s30  ;;  %1154 = vrot.lane.b32.xlu0 %v1143_v3, %s1223_s7 }
  0x24   : > { %306 = vrot.lane.b32.xlu1 %v252_v4, %s1222_s30  ;;  %294 = vrot.lane.b32.xlu0 %v252_v4, %s1223_s7 }
  0x28   : > { %1169 = vrot.lane.b32.xlu1 %v1143_v3, %s1225_s8  ;;  %1164 = vrot.lane.b32.xlu0 %v1143_v3, %s1226_s9 }
  0x2c   : > { %330 = vrot.lane.b32.xlu1 %v252_v4, %s1225_s8  ;;  %318 = vrot.lane.b32.xlu0 %v252_v4, %s1226_s9 }
  0x30   : > { %346 = vrot.lane.b32.xlu1 %v254_v2, %s1229_s10  ;;  %344 = vrot.lane.b32.xlu0 %v253_v1, %s1229_s10 }
  0x34   : > { %342 = vrot.lane.b32.xlu0 %v252_v4, %s1229_s10  ;;  %358 = vperm.xlu1 %1173, %v355_v7  }
  0x86   : > { %v1145_v8 = vpop.permute.xlu1 %1144  ;;  %v1140_v9 = vpop.permute.xlu0 %1139 }
  0x87   : > { %v1142_v10 = vunpack.i.h.bf16 %v1140_v9  ;;  %v1141_v11 = vunpack.i.l.bf16 %v1140_v9  ;;  %v1147_v12 = vunpack.i.h.bf16 %v1145_v8  ;;  %v1146_v13 = vunpack.i.l.bf16 %v1145_v8 }
  0x89   : > { %v1075_v14 = vpack.c.bf16 %v1142_v10, %v254_v2  ;;  %v266_v15 = vsel %vm264_vm1, %v1141_v11, %v1142_v10  ;;  %v278_v24 = vsel %vm276_vm3, %v1146_v13, %v1147_v12 }
  0x8a   : > { %v1150_v16 = vpop.permute.xlu1 %1149  ;;  %v259_v17 = vpop.permute.xlu0 %258  ;;  %v1058_v18 = vpack.c.bf16 %v266_v15, %v253_v1 }
  0x8b   : > { %v1152_v19 = vunpack.i.h.bf16 %v1150_v16  ;;  %v1151_v20 = vunpack.i.l.bf16 %v1150_v16  ;;  %v265_v21 = vsel %vm264_vm1, %v259_v17, %v1141_v11  ;;  %1076 = vmatpush3.bf16.msra.mxu1 %v1075_v14 }
  0x8c   : > { %1059 = vmatprep.subr.bf16.mxu0 %v1058_v18  ;;  %1077 = vmatprep.subr.bf16.mxu1 %v1218_v0  ;;  %v1060_v22 = vpack.c.bf16 %v265_v21, %v252_v4 }
  0x8d   : > { %v1078_v23 = vpack.c.bf16 %v1152_v19, %v1147_v12  ;;  %v290_v25 = vsel %vm288_vm2, %v1151_v20, %v1152_v19 }
  0x8e   : > { %v283_v26 = vpop.permute.xlu1 %282  ;;  %1061 = vmatpush1.bf16.msra.mxu0 %v1060_v22  ;;  %v271_v27 = vpop.permute.xlu0 %270  ;;  %v1062_v28 = vpack.c.bf16 %v290_v25, %v278_v24  ;;  %v545_v25 = vlaneseq }
  0x8f   : > { %v289_v29 = vsel %vm288_vm2, %v283_v26, %v1151_v20  ;;  %v277_v30 = vsel %vm276_vm3, %v271_v27, %v1146_v13  ;;  %1079 = vmatpush3.bf16.msra.mxu1 %v1078_v23  ;;  %v1345_v26 = vld [vmem:[%s1436_s1] sm:$0x7] }
  0x90   : > { %v1064_v31 = vpack.c.bf16 %v289_v29, %v277_v30  ;;  %1063 = vmatprep.subr.bf16.mxu0 %v1062_v28  ;;  %1080 = vmatprep.subr.bf16.mxu1 %v1218_v0  ;;  %v546_v27 = vshrl.u32 %v545_v25, 7  ;;  %vm528_vm12 = vcmp.eq.s32.totalorder %v1345_v26, 1 }
  0x91   : > { %v544_v29 = vsel %vm528_vm12, 1, %v1228_v6 }
  0x92   : > { %v1160_v32 = vpop.permute.xlu1 %1159  ;;  %1065 = vmatpush1.bf16.msra.mxu0 %v1064_v31  ;;  %v1155_v33 = vpop.permute.xlu0 %1154  ;;  %v1348_v28 = vsub.s32 0, %v546_v27  ;;  %v1352_v31 = vsub.s32 2, %v546_v27 }
  0x93   : > { %v1162_v34 = vunpack.i.h.bf16 %v1160_v32  ;;  %v1161_v35 = vunpack.i.l.bf16 %v1160_v32  ;;  %v1157_v36 = vunpack.i.h.bf16 %v1155_v33  ;;  %v1156_v37 = vunpack.i.l.bf16 %v1155_v33 }
  0x94   : > { %v548_v30 = vrot.slane %v544_v29, %v1348_v28  ;;  %v556_v32 = vrot.slane %v544_v29, %v1352_v31  ;;  %v1355_v33 = vsub.s32 1, %v546_v27 }
  0x95   : > { %v1081_v38 = vpack.c.bf16 %v1162_v34, %v1157_v36  ;;  %v302_v39 = vsel %vm300_vm5, %v1156_v37, %v1157_v36  ;;  %v314_v40 = vsel %vm312_vm4, %v1161_v35, %v1162_v34 }
  0x96   : > { %v307_v41 = vpop.permute.xlu1 %306  ;;  %v295_v42 = vpop.permute.xlu0 %294  ;;  %v1066_v43 = vpack.c.bf16 %v314_v40, %v302_v39  ;;  %vm557_vm13 = vcmp.eq.s32.totalorder %v548_v30, 1  ;;  %vm559_vm14 = vcmp.eq.s32.totalorder %v556_v32, 1 }
  0x97   : > { %v313_v44 = vsel %vm312_vm4, %v307_v41, %v1161_v35  ;;  %v301_v45 = vsel %vm300_vm5, %v295_v42, %v1156_v37  ;;  %1082 = vmatpush3.bf16.msra.mxu1 %v1081_v38  ;;  %v552_v38 = vrot.slane %v544_v29, %v1355_v33 }
  0x98   : > { %v1068_v46 = vpack.c.bf16 %v313_v44, %v301_v45  ;;  %1067 = vmatprep.subr.bf16.mxu0 %v1066_v43  ;;  %1083 = vmatprep.subr.bf16.mxu1 %v1218_v0 }
  0x99   : > { %vm558_vm15 = vcmp.eq.s32.totalorder %v552_v38, 1 }
  0x9a   : > { %v1170_v47 = vpop.permute.xlu1 %1169  ;;  %v1165_v48 = vpop.permute.xlu0 %1164  ;;  %1069 = vmatpush1.bf16.msra.mxu0 %v1068_v46 }
  0x9b   : > { %v1172_v49 = vunpack.i.h.bf16 %v1170_v47  ;;  %v1171_v50 = vunpack.i.l.bf16 %v1170_v47  ;;  %v1167_v51 = vunpack.i.h.bf16 %v1165_v48  ;;  %v1166_v52 = vunpack.i.l.bf16 %v1165_v48 }
  0x9d   : > { %v1084_v53 = vpack.c.bf16 %v1172_v49, %v1167_v51  ;;  %v326_v54 = vsel %vm324_vm7, %v1166_v52, %v1167_v51  ;;  %v338_v55 = vsel %vm336_vm6, %v1171_v50, %v1172_v49 }
  0x9e   : > { %v331_v56 = vpop.permute.xlu1 %330  ;;  %v319_v57 = vpop.permute.xlu0 %318  ;;  %v1070_v58 = vpack.c.bf16 %v338_v55, %v326_v54 }
  0x9f   : > { %v337_v59 = vsel %vm336_vm6, %v331_v56, %v1171_v50  ;;  %v325_v60 = vsel %vm324_vm7, %v319_v57, %v1166_v52  ;;  %1085 = vmatpush3.bf16.msra.mxu1 %v1084_v53 }
  0xa0   : > { %v1072_v61 = vpack.c.bf16 %v337_v59, %v325_v60  ;;  %1071 = vmatprep.subr.bf16.mxu0 %v1070_v58  ;;  %1032 = vmatprep.subr.mxu1 %v1224_v5 }
  0xa2   : > { %v347_v63 = vpop.permute.xlu1 %346  ;;  %v345_v1 = vpop.permute.xlu0 %344  ;;  %1073 = vmatpush1.bf16.msra.mxu0 %v1072_v61 }
  0xa3   : > { %v350_v2 = vsel %vm348_vm8, %v345_v1, %v347_v63  ;;  %1033 = vmatpush3.msra.mxu1 %v347_v63 }
  0xa4   : > { %381 = vmatprep.subr.mxu0 %v350_v2  ;;  %1035 = vmatmul.mubr.msk.f32.vlgmr.msra.gmra.mrb[0].mxu1 %vm361_vm9, %v354_v62 }
  0xa5   : > { %1102 = vmatprep.subr.bf16.mxu1 %v1218_v0  ;;  %1055 = vmatprep.mubr.msk.f32.mxu1 %vm1227_vm0, %v1224_v5  ;;  %vm563_vm0 = vcmp.eq.s32.totalorder %v1345_v26, 2 }
  0xa6   : > { %v343_v3 = vpop.permute.xlu0 %342  ;;  %v581_v44 = vsel %vm563_vm0, 1, %v1228_v6 }
  0xa7   : > { %v349_v4 = vsel %vm348_vm8, %v343_v3, %v345_v1  ;;  %v585_v45 = vrot.slane %v581_v44, %v1348_v28  ;;  %v593_v46 = vrot.slane %v581_v44, %v1352_v31  ;;  %v589_v47 = vrot.slane %v581_v44, %v1355_v33 }
  0xa8   : > { %382 = vmatpush1.msra.mxu0 %v349_v4 }
  0xa9   : > { %990 = vmatmul.mubr.msk.f32.vlgmr.msra.gmra.mrb[0].mxu0 %vm361_vm9, %v354_v62  ;;  %vm596_vm12 = vcmp.eq.s32.totalorder %v593_v46, 1 }
  0xaa   : > { %844 = vmatprep.mubr.f32.mxu0 %v1224_v5 }
  0xb3   : > { %v359_v7 = vpop.permute.xlu1 %358 }
 0x177   : > { %v502_v8 = vpop.f32.mrb[0].mxu1 }
 0x178   : > { %v503_v9 = vadd.f32 %v502_v8, %v359_v7  ;;  %v1036_v10 = vpop.f32.mrb[1].mxu1 }
 0x17a   : > { %v508_v11 = vmax.f32 %v503_v9, 0.0 }
 0x17c   : > { %v431_v12 = vpop.f32.mrb[0].mxu0  ;;  %516 = vrot.lane.b32.xlu1 %v508_v11, %s1230_s15 }
 0x17d   : > { %v433_v13 = vpop.f32.mrb[1].mxu0  ;;  %v432_v15 = vadd.f32 %v431_v12, %v359_v7 }
 0x17e   : > { %v434_v14 = vadd.f32 %v433_v13, %v359_v7 }
 0x17f   : > { %v506_v17 = vmax.f32 %v432_v15, 0.0 }
 0x180   : > { %v507_v16 = vmax.f32 %v434_v14, 0.0 }
 0x182   : > { %514 = vrot.lane.b32.xlu0 %v507_v16, %s1230_s15 }
 0x186   : > { %512 = vrot.lane.b32.xlu0 %v506_v17, %s1230_s15 }
 0x1ee   : > { %v517_v19 = vpop.permute.xlu1 %516 }
 0x1f4   : > { %v515_v18 = vpop.permute.xlu0 %514 }
 0x1f5   : > { %v520_v23 = vsel %vm518_vm10, %v515_v18, %v517_v19 }
 0x1f6   : > { %v526_v24 = vsel %vm525_vm11, %v520_v23, 0.0  ;;  %vm594_vm11 = vcmp.eq.s32.totalorder %v585_v45, 1 }
 0x1f8   : > { %v513_v20 = vpop.permute.xlu0 %512 }
 0x1f9   : > { %v524_v21 = vsel %vm518_vm10, 0.0, %v513_v20  ;;  %v519_v22 = vsel %vm518_vm10, %v513_v20, %v515_v18  ;;  %vm574_vm10 = vcmask 15360  }
 0x1fa   : > { %531 = vrot.lane.b32.xlu1 %v524_v21, %s1219_s27  ;;  %533 = vrot.lane.b32.xlu0 %v519_v22, %s1219_s27 }
 0x1fe   : > { %535 = vrot.lane.b32.xlu1 %v526_v24, %s1219_s27 }
 0x26c   : > { %v532_v34 = vpop.permute.xlu1 %531  ;;  %v534_v35 = vpop.permute.xlu0 %533 }
 0x26d   : > { %v537_v36 = vsel %vm276_vm3, %v532_v34, %v534_v35 }
 0x26e   : > { %v560_v37 = vsel %vm557_vm13, %v537_v36, %v524_v21  ;;  %vm595_vm13 = vcmp.eq.s32.totalorder %v589_v47, 1 }
 0x26f   : > { %570 = vrot.lane.b32.xlu1 %v560_v37, %s1231_s18 }
 0x270   : > { %v536_v39 = vpop.permute.xlu1 %535 }
 0x271   : > { %v543_v40 = vsel %vm276_vm3, %v536_v39, %v532_v34  ;;  %v538_v42 = vsel %vm276_vm3, %v534_v35, %v536_v39 }
 0x272   : > { %v562_v41 = vsel %vm559_vm14, %v543_v40, %v526_v24  ;;  %v561_v43 = vsel %vm558_vm15, %v538_v42, %v519_v22  ;;  %vm600_vm14 = vcmp.eq.s32.totalorder %v1345_v26, 3  ;;  %v771_v22 = vld [vmem:[%s1440_s5] sm:$0xff] }
 0x273   : > { %565 = vrot.lane.b32.xlu0 %v562_v41, %s1231_s18  ;;  %v617_v57 = vsel %vm600_vm14, 1, %v1228_v6 }
 0x274   : > { %v629_v58 = vrot.slane %v617_v57, %v1352_v31  ;;  %v621_v59 = vrot.slane %v617_v57, %v1348_v28  ;;  %v625_v61 = vrot.slane %v617_v57, %v1355_v33 }
 0x276   : > { %vm632_vm15 = vcmp.eq.s32.totalorder %v629_v58, 1  ;;  %vm630_vm0 = vcmp.eq.s32.totalorder %v621_v59, 1 }
 0x277   : > { %572 = vrot.lane.b32.xlu0 %v561_v43, %s1231_s18 }
 0x2e1   : > { %v571_v48 = vpop.permute.xlu1 %570 }
 0x2e5   : > { %v566_v49 = vpop.permute.xlu0 %565 }
 0x2e6   : > { %v580_v50 = vsel %vm574_vm10, %v566_v49, %v571_v48 }
 0x2e7   : > { %v597_v51 = vsel %vm594_vm11, %v580_v50, %v560_v37  ;;  %vm636_vm11 = vcmp.eq.s32.totalorder %v1345_v26, 4 }
 0x2e8   : > { %604 = vrot.lane.b32.xlu1 %v597_v51, %s1226_s9  ;;  %v654_v9 = vsel %vm636_vm11, 1, %v1228_v6 }
 0x2e9   : > { %v573_v52 = vpop.permute.xlu0 %572  ;;  %v658_v10 = vrot.slane %v654_v9, %v1348_v28  ;;  %v662_v11 = vrot.slane %v654_v9, %v1355_v33  ;;  %v666_v12 = vrot.slane %v654_v9, %v1352_v31 }
 0x2ea   : > { %v575_v53 = vsel %vm574_vm10, %v571_v48, %v573_v52  ;;  %v576_v54 = vsel %vm574_vm10, %v573_v52, %v566_v49  ;;  %vm631_vm10 = vcmp.eq.s32.totalorder %v625_v61, 1 }
 0x2eb   : > { %v599_v55 = vsel %vm596_vm12, %v576_v54, %v562_v41  ;;  %v598_v56 = vsel %vm595_vm13, %v575_v53, %v561_v43  ;;  %vm647_vm12 = vcmask 293888   ;;  %vm667_vm13 = vcmp.eq.s32.totalorder %v658_v10, 1 }
 0x2ec   : > { %608 = vrot.lane.b32.xlu1 %v599_v55, %s1226_s9  ;;  %606 = vrot.lane.b32.xlu0 %v598_v56, %s1226_s9  ;;  %vm668_vm14 = vcmp.eq.s32.totalorder %v662_v11, 1 }
 0x35a   : > { %v605_v60 = vpop.permute.xlu1 %604 }
 0x35e   : > { %v609_v62 = vpop.permute.xlu1 %608  ;;  %v607_v63 = vpop.permute.xlu0 %606 }
 0x35f   : > { %v616_v1 = vsel %vm324_vm7, %v609_v62, %v605_v60  ;;  %v610_v2 = vsel %vm324_vm7, %v605_v60, %v607_v63  ;;  %v611_v7 = vsel %vm324_vm7, %v607_v63, %v609_v62 }
 0x360   : > { %v635_v3 = vsel %vm632_vm15, %v616_v1, %v599_v55  ;;  %v633_v4 = vsel %vm630_vm0, %v610_v2, %v597_v51  ;;  %v634_v8 = vsel %vm631_vm10, %v611_v7, %v598_v56  ;;  %vm669_vm15 = vcmp.eq.s32.totalorder %v666_v12, 1 }
 0x361   : > { %638 = vrot.lane.b32.xlu0 %v635_v3, %s1232_s19  ;;  %643 = vrot.lane.b32.xlu1 %v633_v4, %s1232_s19 }
 0x365   : > { %645 = vrot.lane.b32.xlu0 %v634_v8, %s1232_s19 }
 0x3d3   : > { %v644_v13 = vpop.permute.xlu1 %643  ;;  %v639_v14 = vpop.permute.xlu0 %638 }
 0x3d4   : > { %v653_v15 = vsel %vm647_vm12, %v639_v14, %v644_v13 }
 0x3d5   : > { %v670_v16 = vsel %vm667_vm13, %v653_v15, %v633_v4  ;;  %v770_v15 = vld [vmem:[%s1439_s4] sm:$0xff] }
 0x3d6   : > { %682 = vrot.lane.b32.xlu0 %v670_v16, %s1220_s28 }
 0x3d7   : > { %v646_v17 = vpop.permute.xlu0 %645 }
 0x3d8   : > { %v648_v18 = vsel %vm647_vm12, %v644_v13, %v646_v17  ;;  %v649_v19 = vsel %vm647_vm12, %v646_v17, %v639_v14 }
 0x3d9   : > { %v671_v6 = vsel %vm668_vm14, %v648_v18, %v634_v8  ;;  %v672_v20 = vsel %vm669_vm15, %v649_v19, %v635_v3 }
 0x3da   : > { %v1184_v21 = vpack.i.bf16 %v672_v20, %v671_v6 }
 0x3dc   : > { %1185 = vrot.lane.b32.xlu0 %v1184_v21, %s1221_s29  ;;  %1175 = vrot.lane.b32.xlu1 %v1184_v21, %s1220_s28 }
 0x3e0   : > { %704 = vrot.lane.b32.xlu0 %v670_v16, %s1221_s29  ;;  %1180 = vrot.lane.b32.xlu1 %v1184_v21, %s1219_s27  ;;  %s251_s29 = scalar_lea.vmem %s1441_s6, %s1114_s23 }
 0x3e4   : > { %1195 = vrot.lane.b32.xlu0 %v1184_v21, %s1222_s30  ;;  %693 = vrot.lane.b32.xlu1 %v670_v16, %s1219_s27 }
 0x3e8   : > { %726 = vrot.lane.b32.xlu0 %v670_v16, %s1222_s30  ;;  %1190 = vrot.lane.b32.xlu1 %v1184_v21, %s1223_s7 }
 0x3ec   : > { %1205 = vrot.lane.b32.xlu0 %v1184_v21, %s1225_s8  ;;  %715 = vrot.lane.b32.xlu1 %v670_v16, %s1223_s7 }
 0x3f0   : > { %748 = vrot.lane.b32.xlu0 %v670_v16, %s1225_s8  ;;  %1200 = vrot.lane.b32.xlu1 %v1184_v21, %s1226_s9 }
 0x3f4   : > { %763 = vrot.lane.b32.xlu0 %v672_v20, %s1229_s10  ;;  %737 = vrot.lane.b32.xlu1 %v670_v16, %s1226_s9 }
 0x3f8   : > { %761 = vrot.lane.b32.xlu1 %v671_v6, %s1229_s10  ;;  %774 = vperm.xlu0 %1209, %v771_v22  }
 0x3fc   : > { %759 = vrot.lane.b32.xlu1 %v670_v16, %s1229_s10 }
 0x448   : > { %v683_v23 = vpop.permute.xlu0 %682 }
 0x44e   : > { %v1176_v24 = vpop.permute.xlu1 %1175  ;;  %v1186_v25 = vpop.permute.xlu0 %1185 }
 0x44f   : > { %v1178_v26 = vunpack.i.h.bf16 %v1176_v24  ;;  %v1177_v27 = vunpack.i.l.bf16 %v1176_v24  ;;  %v1188_v28 = vunpack.i.h.bf16 %v1186_v25  ;;  %v1187_v31 = vunpack.i.l.bf16 %v1186_v25 }
 0x451   : > { %v1103_v29 = vpack.c.bf16 %v1178_v26, %v672_v20  ;;  %v688_v30 = vsel %vm264_vm1, %v683_v23, %v1177_v27  ;;  %v689_v32 = vsel %vm264_vm1, %v1177_v27, %v1178_v26  ;;  %v711_v41 = vsel %vm288_vm2, %v1187_v31, %v1188_v28 }
 0x452   : > { %v1088_v33 = vpack.c.bf16 %v688_v30, %v670_v16  ;;  %v1181_v34 = vpop.permute.xlu1 %1180  ;;  %v705_v35 = vpop.permute.xlu0 %704  ;;  %v1086_v36 = vpack.c.bf16 %v689_v32, %v671_v6  ;;  %vm926_vm1 = vcmask 261120  }
 0x453   : > { %v1183_v37 = vunpack.i.h.bf16 %v1181_v34  ;;  %v1182_v38 = vunpack.i.l.bf16 %v1181_v34  ;;  %1104 = vmatpush3.bf16.msra.mxu1 %v1103_v29  ;;  %v710_v45 = vsel %vm288_vm2, %v705_v35, %v1187_v31 }
 0x454   : > { %1087 = vmatprep.subr.bf16.mxu0 %v1086_v36  ;;  %1105 = vmatprep.subr.bf16.mxu1 %v1218_v0 }
 0x455   : > { %v1106_v39 = vpack.c.bf16 %v1188_v28, %v1183_v37  ;;  %1089 = vmatpush1.bf16.msra.mxu0 %v1088_v33  ;;  %v700_v40 = vsel %vm276_vm3, %v1182_v38, %v1183_v37 }
 0x456   : > { %v694_v42 = vpop.permute.xlu1 %693  ;;  %v1196_v43 = vpop.permute.xlu0 %1195  ;;  %v1090_v44 = vpack.c.bf16 %v711_v41, %v700_v40 }
 0x457   : > { %v699_v46 = vsel %vm276_vm3, %v694_v42, %v1182_v38  ;;  %1107 = vmatpush3.bf16.msra.mxu1 %v1106_v39  ;;  %v1198_v48 = vunpack.i.h.bf16 %v1196_v43  ;;  %v1197_v49 = vunpack.i.l.bf16 %v1196_v43 }
 0x458   : > { %v1092_v47 = vpack.c.bf16 %v710_v45, %v699_v46  ;;  %1091 = vmatprep.subr.bf16.mxu0 %v1090_v44  ;;  %1108 = vmatprep.subr.bf16.mxu1 %v1218_v0 }
 0x459   : > { %v733_v56 = vsel %vm312_vm4, %v1197_v49, %v1198_v48 }
 0x45a   : > { %v1191_v50 = vpop.permute.xlu1 %1190  ;;  %v727_v51 = vpop.permute.xlu0 %726  ;;  %1093 = vmatpush1.bf16.msra.mxu0 %v1092_v47 }
 0x45b   : > { %v1193_v52 = vunpack.i.h.bf16 %v1191_v50  ;;  %v1192_v53 = vunpack.i.l.bf16 %v1191_v50  ;;  %v732_v60 = vsel %vm312_vm4, %v727_v51, %v1197_v49 }
 0x45d   : > { %v1109_v54 = vpack.c.bf16 %v1198_v48, %v1193_v52  ;;  %v722_v55 = vsel %vm300_vm5, %v1192_v53, %v1193_v52 }
 0x45e   : > { %v716_v57 = vpop.permute.xlu1 %715  ;;  %v1206_v58 = vpop.permute.xlu0 %1205  ;;  %v1094_v59 = vpack.c.bf16 %v733_v56, %v722_v55 }
 0x45f   : > { %v721_v61 = vsel %vm300_vm5, %v716_v57, %v1192_v53  ;;  %1110 = vmatpush3.bf16.msra.mxu1 %v1109_v54  ;;  %v1208_v63 = vunpack.i.h.bf16 %v1206_v58  ;;  %v1207_v1 = vunpack.i.l.bf16 %v1206_v58 }
 0x460   : > { %v1096_v62 = vpack.c.bf16 %v732_v60, %v721_v61  ;;  %1095 = vmatprep.subr.bf16.mxu0 %v1094_v59  ;;  %1111 = vmatprep.subr.bf16.mxu1 %v1218_v0 }
 0x461   : > { %v755_v10 = vsel %vm336_vm6, %v1207_v1, %v1208_v63 }
 0x462   : > { %v1201_v2 = vpop.permute.xlu1 %1200  ;;  %1097 = vmatpush1.bf16.msra.mxu0 %v1096_v62  ;;  %v749_v7 = vpop.permute.xlu0 %748 }
 0x463   : > { %v1203_v3 = vunpack.i.h.bf16 %v1201_v2  ;;  %v1202_v4 = vunpack.i.l.bf16 %v1201_v2  ;;  %v754_v13 = vsel %vm336_vm6, %v749_v7, %v1207_v1 }
 0x465   : > { %v1112_v8 = vpack.c.bf16 %v1208_v63, %v1203_v3  ;;  %v744_v9 = vsel %vm324_vm7, %v1202_v4, %v1203_v3 }
 0x466   : > { %v738_v11 = vpop.permute.xlu1 %737  ;;  %v1098_v12 = vpack.c.bf16 %v755_v10, %v744_v9  ;;  %v764_v16 = vpop.permute.xlu0 %763 }
 0x467   : > { %v743_v14 = vsel %vm324_vm7, %v738_v11, %v1202_v4  ;;  %1113 = vmatpush3.bf16.msra.mxu1 %v1112_v8 }
 0x468   : > { %v1100_v0 = vpack.c.bf16 %v754_v13, %v743_v14  ;;  %1099 = vmatprep.subr.bf16.mxu0 %v1098_v12  ;;  %1053 = vmatprep.subr.mxu1 %v1224_v5 }
 0x46a   : > { %v762_v17 = vpop.permute.xlu1 %761  ;;  %1101 = vmatpush1.bf16.msra.mxu0 %v1100_v0 }
 0x46b   : > { %1054 = vmatpush3.msra.mxu1 %v764_v16  ;;  %v766_v18 = vsel %vm348_vm8, %v762_v17, %v764_v16 }
 0x46c   : > { %796 = vmatprep.subr.mxu0 %v766_v18  ;;  %1056 = vmatmul.mubr.msk.f32.vlgmr.msra.gmra.mrb[2].mxu1 %vm361_vm9, %v770_v15 }
 0x46e   : > { %v760_v19 = vpop.permute.xlu1 %759 }
 0x46f   : > { %v765_v6 = vsel %vm348_vm8, %v760_v19, %v762_v17 }
 0x470   : > { %797 = vmatpush1.msra.mxu0 %v765_v6 }
 0x471   : > { %992 = vmatmul.mubr.msk.f32.vlgmr.msra.gmra.mrb[2].mxu0 %vm361_vm9, %v770_v15 }
 0x477   : > { %v775_v5 = vpop.permute.xlu0 %774 }
 0x53f   : > { %v917_v20 = vpop.f32.mrb[2].mxu1 }
 0x540   : > { %v918_v21 = vadd.f32 %v917_v20, %v775_v5  ;;  %v1057_v22 = vpop.f32.mrb[3].mxu1 }
 0x542   : > { %v923_v23 = vmax.f32 %v918_v21, 0.0 }
 0x544   : > { %v846_v24 = vpop.f32.mrb[2].mxu0  ;;  %927 = vst.msk [vmem:[%s251_s29 + $0x10] sm:$0xff] %vm926_vm1, %v923_v23 }
 0x545   : > { %v847_v25 = vadd.f32 %v846_v24, %v775_v5  ;;  %v848_v26 = vpop.f32.mrb[3].mxu0 }
 0x546   : > { %v849_v27 = vadd.f32 %v848_v26, %v775_v5 }
 0x547   : > { %v921_v28 = vmax.f32 %v847_v25, 0.0 }
 0x548   : > { %v922_v29 = vmax.f32 %v849_v27, 0.0 }
 0x549   : > { %924 = vst [vmem:[%s251_s29] sm:$0xff] %v921_v28 }
 0x54a   : > { %925 = vst [vmem:[%s251_s29 + $0x8] sm:$0xff] %v922_v29 }
 0x54b PF: > { %s16_s21 = sadd.s32 1, %s1216_s21  }
 0x54c   : > { %p13_p4 = scmp.ge.s32.totalorder %s16_s21, 4  }
 0x54e   :  { %15 = sbr.rel (!%p13_p4) target bundleno = 1 (0x1), region = 74 }

</bundles_post_ra>
